<compile_context>
chip_gen: v5e
topology: v5e:2x2
jax: 0.10.0
libtpu: 0.0.40
codegen_flags: <defaults>
</compile_context>

<pallas_src>
import functools

import jax
import jax.numpy as jnp
from jax import lax
from jax.experimental import pallas as pl
from jax.experimental.pallas import tpu as pltpu

BN_EPS = 1e-5


def _round_up(x, m):
    return (x + m - 1) // m * m


# --------------------------------------------------------------------------- kernels
def _conv_stats_kernel(x_ref, w_ref, act_ref, stats_ref, pad_ref, col_ref,
                       *, hc, wc, cin, cout, do_pool):
    """Fused pool + pad + im2col (VMEM only) + GEMM + BN partial stats, one image.

    x_ref    : do_pool ? (1, 2*hc, wc, 2*cin) : (1, hc, wc, cin)   f32
    w_ref    : (9*cin, Cp)          packed conv weight, lane-dense (compute dtype)
    act_ref  : (1, hc*wc, cout)     pre-BN activations, UNPADDED (compute dtype)
    stats_ref: (1, 2, Cp) f32       [0]=sum over rows, [1]=sum((x-mean_img)^2)
    pad_ref  : (hc+2, wc+2, cin)    zero-padded pooled image (compute dtype scratch)
    col_ref  : (hc, wc, 9*cin)      im2col scratch — never touches HBM
    """
    if do_pool:
        # W-pairs were packed into channels by a free wrapper reshape, so the
        # horizontal 2:1 reduction is a pair of lane slices; the vertical 2:1
        # is a leading-dim split.  Input is read exactly once.
        x = x_ref[0]                                          # (2hc, wc, 2cin)
        xh = jnp.maximum(x[:, :, :cin], x[:, :, cin:])        # (2hc, wc, cin)
        xv = xh.reshape(hc, 2, wc, cin)
        pooled = jnp.maximum(xv[:, 0, :, :], xv[:, 1, :, :])  # (hc, wc, cin)
    else:
        pooled = x_ref[0]                                     # (hc, wc, cin)

    # Zero only the 1-pixel conv border (4 thin slabs); interior is overwritten.
    zrow = jnp.zeros((1, wc + 2, cin), pad_ref.dtype)
    zcol = jnp.zeros((hc + 2, 1, cin), pad_ref.dtype)
    pad_ref[0:1, :, :] = zrow
    pad_ref[hc + 1:hc + 2, :, :] = zrow
    pad_ref[:, 0:1, :] = zcol
    pad_ref[:, wc + 1:wc + 2, :] = zcol
    pad_ref[1:hc + 1, 1:wc + 1, :] = pooled.astype(pad_ref.dtype)

    # 3x3 im2col into VMEM scratch: tap t = ky*3+kx -> lanes [t*cin, (t+1)*cin).
    # (Strided slab copies, no per-tap flatten across the padded-W stride.)
    for ky in range(3):
        for kx in range(3):
            t = ky * 3 + kx
            col_ref[:, :, t * cin:(t + 1) * cin] = pad_ref[ky:ky + hc, kx:kx + wc, :]

    rows = hc * wc
    k = 9 * cin
    # Single MXU GEMM over the whole image (lane-dense Cp output columns).
    acc = jnp.dot(col_ref[...].reshape(rows, k), w_ref[...],
                  preferred_element_type=jnp.float32)         # (rows, Cp) f32

    # Unpadded activations to HBM (compute dtype): the Cp-Cout columns are
    # all-zero anyway and would only waste HBM bytes.
    act_ref[0] = acc[:, :cout].astype(act_ref.dtype)

    # Numerically-stable per-image partials: sum and mean-centered M2.
    s = jnp.sum(acc, axis=0, keepdims=True)                   # (1, Cp)
    mean_img = s * (1.0 / rows)
    d = acc - mean_img
    stats_ref[0, 0:1, :] = s
    stats_ref[0, 1:2, :] = jnp.sum(d * d, axis=0, keepdims=True)


def _bn_relu_kernel(a_ref, scale_ref, shift_ref, o_ref):
    """y = relu(act * scale + shift) — BN folded into a per-channel FMA (f32)."""
    y = a_ref[0].astype(jnp.float32) * scale_ref[...] + shift_ref[...]
    o_ref[0] = jnp.maximum(y, 0.0)


# --------------------------------------------------------------------------- wrapper
def down_conv_bn_relu(x_nchw, weight_oihw, gamma, beta, *, down_flag=True,
                      compute_dtype=jnp.bfloat16, vmem_limit_mb=64):
    """Forward pass of DownConvBNReLU.

    x_nchw      : (N, Cin, H, W)    float32
    weight_oihw : (Cout, Cin, 3, 3) float32  (PyTorch Conv2d layout, no bias)
    gamma, beta : (Cout,)           float32  (BatchNorm affine)
    returns     : (N, Cout, H', W') float32, H' = ceil(H/2) if down_flag
    """
    assert weight_oihw.shape[2:] == (3, 3), "only 3x3 / dilation=1 supported"

    x = jnp.transpose(x_nchw, (0, 2, 3, 1)).astype(jnp.float32)   # NCHW -> NHWC
    N, H, W, Cin = x.shape
    Cout = weight_oihw.shape[0]

    if down_flag:
        # max_pool2d(2,2,ceil_mode=True): pad to even with -inf (no-op if even).
        Hc, Wc = -(-H // 2), -(-W // 2)
        if (2 * Hc != H) or (2 * Wc != W):
            x = jnp.pad(x, ((0, 0), (0, 2 * Hc - H), (0, 2 * Wc - W), (0, 0)),
                        constant_values=-jnp.inf)
        # Free contiguous reshape: pack W-pairs into channels so the kernel can
        # pool with lane slices + a leading-dim split (single read of x).
        x_in = x.reshape(N, 2 * Hc, Wc, 2 * Cin)
    else:
        Hc, Wc = H, W
        x_in = x

    R = Hc * Wc                              # output rows per image
    K = 9 * Cin                              # im2col contraction depth
    Cp = _round_up(Cout, 128)                # lane-dense GEMM output columns

    # Conv weights packed as one (9*Cin, Cp) matrix: row index = t*Cin + c,
    # t = ky*3 + kx, matching the im2col layout in the kernel.
    w = jnp.transpose(weight_oihw.astype(jnp.float32), (2, 3, 1, 0)).reshape(K, Cout)
    w = jnp.pad(w, ((0, 0), (0, Cp - Cout))).astype(compute_dtype)

    cparams = pltpu.CompilerParams(
        dimension_semantics=("parallel",),               # shards images across TCs
        vmem_limit_bytes=vmem_limit_mb * 1024 * 1024,    # raised per review (cap ~48MB on v7x)
    )

    # ---- pass 1: fused pool + pad + im2col + GEMM + per-image BN partials -----
    act, stats = pl.pallas_call(
        functools.partial(_conv_stats_kernel, hc=Hc, wc=Wc, cin=Cin,
                          cout=Cout, do_pool=down_flag),
        out_shape=(jax.ShapeDtypeStruct((N, R, Cout), compute_dtype),
                   jax.ShapeDtypeStruct((N, 2, Cp), jnp.float32)),
        grid=(N,),
        in_specs=[pl.BlockSpec((1,) + tuple(x_in.shape[1:]),
                               lambda n: (n, 0, 0, 0)),
                  pl.BlockSpec((K, Cp), lambda n: (0, 0))],   # constant -> fetched once
        out_specs=(pl.BlockSpec((1, R, Cout), lambda n: (n, 0, 0)),
                   pl.BlockSpec((1, 2, Cp), lambda n: (n, 0, 0))),
        scratch_shapes=[pltpu.VMEM((Hc + 2, Wc + 2, Cin), compute_dtype),
                        pltpu.VMEM((Hc, Wc, K), compute_dtype)],
        compiler_params=cparams,
    )(x_in, w)

    # ---- BN finalize: Welford-style merge of per-image (sum, M2) -> scale/shift
    s_i = stats[:, 0, :Cout]                      # (N, Cout)
    m2_i = stats[:, 1, :Cout]
    mean_i = s_i / R
    mean = jnp.mean(mean_i, axis=0)               # equal counts per image
    m2 = jnp.sum(m2_i, axis=0) + R * jnp.sum((mean_i - mean[None, :]) ** 2, axis=0)
    var = jnp.maximum(m2 / (N * R), 0.0)          # biased (training-mode) variance
    scale = gamma.astype(jnp.float32) * lax.rsqrt(var + BN_EPS)
    shift = beta.astype(jnp.float32) - mean * scale

    # ---- pass 2: normalize + ReLU, writing the final unpadded NHWC directly ----
    out_nhwc = pl.pallas_call(
        _bn_relu_kernel,
        out_shape=jax.ShapeDtypeStruct((N, R, Cout), jnp.float32),
        grid=(N,),
        in_specs=[pl.BlockSpec((1, R, Cout), lambda n: (n, 0, 0)),
                  pl.BlockSpec((1, Cout), lambda n: (0, 0)),
                  pl.BlockSpec((1, Cout), lambda n: (0, 0))],
        out_specs=pl.BlockSpec((1, R, Cout), lambda n: (n, 0, 0)),
        compiler_params=cparams,
    )(act, scale.reshape(1, Cout), shift.reshape(1, Cout))

    out = out_nhwc.reshape(N, Hc, Wc, Cout)       # free (contiguous) reshape
    return jnp.transpose(out, (0, 3, 1, 2))       # NHWC -> NCHW (interface only)


# --------------------------------------------------------------------------- reference
def _reference(x_nchw, weight_oihw, gamma, beta, *, down_flag=True,
               compute_dtype=jnp.float32):
    x = x_nchw.astype(jnp.float32)
    if down_flag:
        N, C, H, W = x.shape
        Hc, Wc = -(-H // 2), -(-W // 2)
        x = jnp.pad(x, ((0, 0), (0, 0), (0, 2 * Hc - H), (0, 2 * Wc - W)),
                    constant_values=-jnp.inf)
        x = x.reshape(N, C, Hc, 2, Wc, 2).max(axis=(3, 5))
    y = lax.conv_general_dilated(
        x.astype(compute_dtype), weight_oihw.astype(compute_dtype),
        window_strides=(1, 1), padding=((1, 1), (1, 1)),
        dimension_numbers=("NCHW", "OIHW", "NCHW"),
        preferred_element_type=jnp.float32)
    mean = jnp.mean(y, axis=(0, 2, 3), keepdims=True)
    var = jnp.mean((y - mean) ** 2, axis=(0, 2, 3), keepdims=True)
    y = (y - mean) * lax.rsqrt(var + BN_EPS)
    y = y * gamma[None, :, None, None] + beta[None, :, None, None]
    return jnp.maximum(y, 0.0)


# --------------------------------------------------------------------------- main
if __name__ == "__main__":
    key = jax.random.PRNGKey(0)
    k_x, k_w, k_g, k_b = jax.random.split(key, 4)

    N, Cin, Cout, H, W = 2, 4, 8, 16, 16
    x = jax.random.normal(k_x, (N, Cin, H, W), jnp.float32)
    weight = jax.random.normal(k_w, (Cout, Cin, 3, 3), jnp.float32) * 0.1
    gamma = jax.random.normal(k_g, (Cout,), jnp.float32) * 0.5 + 1.0
    beta = jax.random.normal(k_b, (Cout,), jnp.float32) * 0.1

    # 1) exact-precision path (f32 MXU inputs) vs the f32 reference.
    fwd32 = jax.jit(functools.partial(down_conv_bn_relu, down_flag=True,
                                      compute_dtype=jnp.float32))
    out32 = jax.block_until_ready(fwd32(x, weight, gamma, beta))
    ref32 = _reference(x, weight, gamma, beta, down_flag=True,
                       compute_dtype=jnp.float32)
    assert out32.shape == (N, Cout, H // 2, W // 2), out32.shape
    assert jnp.allclose(out32, ref32, atol=2e-3, rtol=2e-3), \
        float(jnp.max(jnp.abs(out32 - ref32)))

    # 2) perf-default path (bf16 MXU inputs + bf16 activation intermediate,
    #    f32 accumulate + f32 BN).  The bf16 rounding of the pre-BN activations
    #    (absent in the reference, which normalizes the raw f32 conv output)
    #    gives ~1e-2 absolute error after dividing by the batch std, so this
    #    check uses a 4e-2 tolerance; real bugs show up as O(0.5) errors.
    fwd16 = jax.jit(functools.partial(down_conv_bn_relu, down_flag=True,
                                      compute_dtype=jnp.bfloat16))
    out16 = jax.block_until_ready(fwd16(x, weight, gamma, beta))
    ref16 = _reference(x, weight, gamma, beta, down_flag=True,
                       compute_dtype=jnp.bfloat16)
    assert jnp.allclose(out16, ref16, atol=4e-2, rtol=4e-2), \
        float(jnp.max(jnp.abs(out16 - ref16)))

    # 3) down_flag=False branch (no pooling).
    fwd_nd = jax.jit(functools.partial(down_conv_bn_relu, down_flag=False,
                                       compute_dtype=jnp.float32))
    out_nd = jax.block_until_ready(fwd_nd(x, weight, gamma, beta))
    ref_nd = _reference(x, weight, gamma, beta, down_flag=False,
                        compute_dtype=jnp.float32)
    assert out_nd.shape == (N, Cout, H, W), out_nd.shape
    assert jnp.allclose(out_nd, ref_nd, atol=2e-3, rtol=2e-3), \
        float(jnp.max(jnp.abs(out_nd - ref_nd)))

    # 4) ceil_mode path (odd spatial size) — also exercises the removal of the
    #    old rows_per_img % 16 restriction.
    x_odd = jax.random.normal(k_x, (N, Cin, 15, 15), jnp.float32)
    out_odd = jax.block_until_ready(fwd32(x_odd, weight, gamma, beta))
    ref_odd = _reference(x_odd, weight, gamma, beta, down_flag=True,
                         compute_dtype=jnp.float32)
    assert out_odd.shape == (N, Cout, 8, 8), out_odd.shape
    assert jnp.allclose(out_odd, ref_odd, atol=2e-3, rtol=2e-3), \
        float(jnp.max(jnp.abs(out_odd - ref_odd)))

    print("KERNEL_OK")
</pallas_src>

<mosaic_0001>
module attributes {stable_mosaic.version = 11 : i64} {
  func.func @_conv_stats_kernel(%arg0: i32, %arg1: memref<1x16x8x8xf32, #tpu.memory_space<vmem>>, %arg2: memref<36x128xf32, #tpu.memory_space<vmem>>, %arg3: memref<1x64x8xf32, #tpu.memory_space<vmem>>, %arg4: memref<1x2x128xf32, #tpu.memory_space<vmem>>, %arg5: memref<10x10x4xf32, #tpu.memory_space<vmem>>, %arg6: memref<8x8x36xf32, #tpu.memory_space<vmem>>) attributes {dimension_semantics = [#tpu.dimension_semantics<parallel>], iteration_bounds = array<i64: 2>, scalar_prefetch = 0 : i64, scratch_operands = 2 : i64, tpu.core_type = #tpu.core_type<tc>, window_params = [{transform_indices = @transform_0, window_bounds = array<i64: 1, 16, 8, 8>}, {pipeline_mode = #tpu.pipeline_mode<synchronous>, transform_indices = @transform_1, window_bounds = array<i64: 36, 128>}, {transform_indices = @transform_2, window_bounds = array<i64: 1, 64, 8>}, {transform_indices = @transform_3, window_bounds = array<i64: 1, 2, 128>}]} {
    %c0 = arith.constant 0 : index
    %c0_0 = arith.constant 0 : index
    %c0_1 = arith.constant 0 : index
    %c0_2 = arith.constant 0 : index
    %0 = vector.load %arg1[%c0, %c0_0, %c0_1, %c0_2] : memref<1x16x8x8xf32, #tpu.memory_space<vmem>>, vector<1x16x8x8xf32>
    %1 = vector.shape_cast %0 : vector<1x16x8x8xf32> to vector<16x8x8xf32>
    %2 = vector.extract_strided_slice %1 {offsets = [0, 0, 0], sizes = [16, 8, 4], strides = [1, 1, 1]} : vector<16x8x8xf32> to vector<16x8x4xf32>
    %3 = vector.extract_strided_slice %1 {offsets = [0, 0, 4], sizes = [16, 8, 4], strides = [1, 1, 1]} : vector<16x8x8xf32> to vector<16x8x4xf32>
    %4 = arith.maximumf %2, %3 : vector<16x8x4xf32>
    %5 = vector.shape_cast %4 : vector<16x8x4xf32> to vector<8x2x8x4xf32>
    %6 = vector.extract_strided_slice %5 {offsets = [0, 0, 0, 0], sizes = [8, 1, 8, 4], strides = [1, 1, 1, 1]} : vector<8x2x8x4xf32> to vector<8x1x8x4xf32>
    %7 = vector.shape_cast %6 : vector<8x1x8x4xf32> to vector<8x8x4xf32>
    %8 = vector.extract_strided_slice %5 {offsets = [0, 1, 0, 0], sizes = [8, 1, 8, 4], strides = [1, 1, 1, 1]} : vector<8x2x8x4xf32> to vector<8x1x8x4xf32>
    %9 = vector.shape_cast %8 : vector<8x1x8x4xf32> to vector<8x8x4xf32>
    %10 = arith.maximumf %7, %9 : vector<8x8x4xf32>
    %cst = arith.constant 0.000000e+00 : f32
    %11 = vector.broadcast %cst : f32 to vector<1x10x4xf32>
    %cst_3 = arith.constant 0.000000e+00 : f32
    %12 = vector.broadcast %cst_3 : f32 to vector<10x1x4xf32>
    %c0_4 = arith.constant 0 : index
    %c0_5 = arith.constant 0 : index
    %c0_6 = arith.constant 0 : index
    %13 = vector.load %arg5[%c0_4, %c0_5, %c0_6] : memref<10x10x4xf32, #tpu.memory_space<vmem>>, vector<1x10x4xf32>
    tpu.vector_store %arg5[%c0_4, %c0_5, %c0_6], %11 {strides = array<i32>} : memref<10x10x4xf32, #tpu.memory_space<vmem>>, vector<1x10x4xf32>,
    %c9 = arith.constant 9 : index
    %c0_7 = arith.constant 0 : index
    %c0_8 = arith.constant 0 : index
    %14 = vector.load %arg5[%c9, %c0_7, %c0_8] : memref<10x10x4xf32, #tpu.memory_space<vmem>>, vector<1x10x4xf32>
    tpu.vector_store %arg5[%c9, %c0_7, %c0_8], %11 {strides = array<i32>} : memref<10x10x4xf32, #tpu.memory_space<vmem>>, vector<1x10x4xf32>,
    %c0_9 = arith.constant 0 : index
    %c0_10 = arith.constant 0 : index
    %c0_11 = arith.constant 0 : index
    %15 = vector.load %arg5[%c0_9, %c0_10, %c0_11] : memref<10x10x4xf32, #tpu.memory_space<vmem>>, vector<10x1x4xf32>
    tpu.vector_store %arg5[%c0_9, %c0_10, %c0_11], %12 {strides = array<i32>} : memref<10x10x4xf32, #tpu.memory_space<vmem>>, vector<10x1x4xf32>,
    %c0_12 = arith.constant 0 : index
    %c9_13 = arith.constant 9 : index
    %c0_14 = arith.constant 0 : index
    %16 = vector.load %arg5[%c0_12, %c9_13, %c0_14] : memref<10x10x4xf32, #tpu.memory_space<vmem>>, vector<10x1x4xf32>
    tpu.vector_store %arg5[%c0_12, %c9_13, %c0_14], %12 {strides = array<i32>} : memref<10x10x4xf32, #tpu.memory_space<vmem>>, vector<10x1x4xf32>,
    %c1 = arith.constant 1 : index
    %c1_15 = arith.constant 1 : index
    %c0_16 = arith.constant 0 : index
    %17 = vector.load %arg5[%c1, %c1_15, %c0_16] : memref<10x10x4xf32, #tpu.memory_space<vmem>>, vector<8x8x4xf32>
    tpu.vector_store %arg5[%c1, %c1_15, %c0_16], %10 {strides = array<i32>} : memref<10x10x4xf32, #tpu.memory_space<vmem>>, vector<8x8x4xf32>,
    %c0_17 = arith.constant 0 : index
    %c0_18 = arith.constant 0 : index
    %c0_19 = arith.constant 0 : index
    %18 = vector.load %arg5[%c0_17, %c0_18, %c0_19] : memref<10x10x4xf32, #tpu.memory_space<vmem>>, vector<8x8x4xf32>
    %c0_20 = arith.constant 0 : index
    %c0_21 = arith.constant 0 : index
    %c0_22 = arith.constant 0 : index
    %19 = vector.load %arg6[%c0_20, %c0_21, %c0_22] : memref<8x8x36xf32, #tpu.memory_space<vmem>>, vector<8x8x4xf32>
    tpu.vector_store %arg6[%c0_20, %c0_21, %c0_22], %18 {strides = array<i32>} : memref<8x8x36xf32, #tpu.memory_space<vmem>>, vector<8x8x4xf32>,
    %c0_23 = arith.constant 0 : index
    %c1_24 = arith.constant 1 : index
    %c0_25 = arith.constant 0 : index
    %20 = vector.load %arg5[%c0_23, %c1_24, %c0_25] : memref<10x10x4xf32, #tpu.memory_space<vmem>>, vector<8x8x4xf32>
    %c0_26 = arith.constant 0 : index
    %c0_27 = arith.constant 0 : index
    %c4 = arith.constant 4 : index
    %21 = vector.load %arg6[%c0_26, %c0_27, %c4] : memref<8x8x36xf32, #tpu.memory_space<vmem>>, vector<8x8x4xf32>
    tpu.vector_store %arg6[%c0_26, %c0_27, %c4], %20 {strides = array<i32>} : memref<8x8x36xf32, #tpu.memory_space<vmem>>, vector<8x8x4xf32>,
    %c0_28 = arith.constant 0 : index
    %c2 = arith.constant 2 : index
    %c0_29 = arith.constant 0 : index
    %22 = vector.load %arg5[%c0_28, %c2, %c0_29] : memref<10x10x4xf32, #tpu.memory_space<vmem>>, vector<8x8x4xf32>
    %c0_30 = arith.constant 0 : index
    %c0_31 = arith.constant 0 : index
    %c8 = arith.constant 8 : index
    %23 = vector.load %arg6[%c0_30, %c0_31, %c8] : memref<8x8x36xf32, #tpu.memory_space<vmem>>, vector<8x8x4xf32>
    tpu.vector_store %arg6[%c0_30, %c0_31, %c8], %22 {strides = array<i32>} : memref<8x8x36xf32, #tpu.memory_space<vmem>>, vector<8x8x4xf32>,
    %c1_32 = arith.constant 1 : index
    %c0_33 = arith.constant 0 : index
    %c0_34 = arith.constant 0 : index
    %24 = vector.load %arg5[%c1_32, %c0_33, %c0_34] : memref<10x10x4xf32, #tpu.memory_space<vmem>>, vector<8x8x4xf32>
    %c0_35 = arith.constant 0 : index
    %c0_36 = arith.constant 0 : index
    %c12 = arith.constant 12 : index
    %25 = vector.load %arg6[%c0_35, %c0_36, %c12] : memref<8x8x36xf32, #tpu.memory_space<vmem>>, vector<8x8x4xf32>
    tpu.vector_store %arg6[%c0_35, %c0_36, %c12], %24 {strides = array<i32>} : memref<8x8x36xf32, #tpu.memory_space<vmem>>, vector<8x8x4xf32>,
    %c1_37 = arith.constant 1 : index
    %c1_38 = arith.constant 1 : index
    %c0_39 = arith.constant 0 : index
    %26 = vector.load %arg5[%c1_37, %c1_38, %c0_39] : memref<10x10x4xf32, #tpu.memory_space<vmem>>, vector<8x8x4xf32>
    %c0_40 = arith.constant 0 : index
    %c0_41 = arith.constant 0 : index
    %c16 = arith.constant 16 : index
    %27 = vector.load %arg6[%c0_40, %c0_41, %c16] : memref<8x8x36xf32, #tpu.memory_space<vmem>>, vector<8x8x4xf32>
    tpu.vector_store %arg6[%c0_40, %c0_41, %c16], %26 {strides = array<i32>} : memref<8x8x36xf32, #tpu.memory_space<vmem>>, vector<8x8x4xf32>,
    %c1_42 = arith.constant 1 : index
    %c2_43 = arith.constant 2 : index
    %c0_44 = arith.constant 0 : index
    %28 = vector.load %arg5[%c1_42, %c2_43, %c0_44] : memref<10x10x4xf32, #tpu.memory_space<vmem>>, vector<8x8x4xf32>
    %c0_45 = arith.constant 0 : index
    %c0_46 = arith.constant 0 : index
    %c20 = arith.constant 20 : index
    %29 = vector.load %arg6[%c0_45, %c0_46, %c20] : memref<8x8x36xf32, #tpu.memory_space<vmem>>, vector<8x8x4xf32>
    tpu.vector_store %arg6[%c0_45, %c0_46, %c20], %28 {strides = array<i32>} : memref<8x8x36xf32, #tpu.memory_space<vmem>>, vector<8x8x4xf32>,
    %c2_47 = arith.constant 2 : index
    %c0_48 = arith.constant 0 : index
    %c0_49 = arith.constant 0 : index
    %30 = vector.load %arg5[%c2_47, %c0_48, %c0_49] : memref<10x10x4xf32, #tpu.memory_space<vmem>>, vector<8x8x4xf32>
    %c0_50 = arith.constant 0 : index
    %c0_51 = arith.constant 0 : index
    %c24 = arith.constant 24 : index
    %31 = vector.load %arg6[%c0_50, %c0_51, %c24] : memref<8x8x36xf32, #tpu.memory_space<vmem>>, vector<8x8x4xf32>
    tpu.vector_store %arg6[%c0_50, %c0_51, %c24], %30 {strides = array<i32>} : memref<8x8x36xf32, #tpu.memory_space<vmem>>, vector<8x8x4xf32>,
    %c2_52 = arith.constant 2 : index
    %c1_53 = arith.constant 1 : index
    %c0_54 = arith.constant 0 : index
    %32 = vector.load %arg5[%c2_52, %c1_53, %c0_54] : memref<10x10x4xf32, #tpu.memory_space<vmem>>, vector<8x8x4xf32>
    %c0_55 = arith.constant 0 : index
    %c0_56 = arith.constant 0 : index
    %c28 = arith.constant 28 : index
    %33 = vector.load %arg6[%c0_55, %c0_56, %c28] : memref<8x8x36xf32, #tpu.memory_space<vmem>>, vector<8x8x4xf32>
    tpu.vector_store %arg6[%c0_55, %c0_56, %c28], %32 {strides = array<i32>} : memref<8x8x36xf32, #tpu.memory_space<vmem>>, vector<8x8x4xf32>,
    %c2_57 = arith.constant 2 : index
    %c2_58 = arith.constant 2 : index
    %c0_59 = arith.constant 0 : index
    %34 = vector.load %arg5[%c2_57, %c2_58, %c0_59] : memref<10x10x4xf32, #tpu.memory_space<vmem>>, vector<8x8x4xf32>
    %c0_60 = arith.constant 0 : index
    %c0_61 = arith.constant 0 : index
    %c32 = arith.constant 32 : index
    %35 = vector.load %arg6[%c0_60, %c0_61, %c32] : memref<8x8x36xf32, #tpu.memory_space<vmem>>, vector<8x8x4xf32>
    tpu.vector_store %arg6[%c0_60, %c0_61, %c32], %34 {strides = array<i32>} : memref<8x8x36xf32, #tpu.memory_space<vmem>>, vector<8x8x4xf32>,
    %c0_62 = arith.constant 0 : index
    %c0_63 = arith.constant 0 : index
    %c0_64 = arith.constant 0 : index
    %36 = vector.load %arg6[%c0_62, %c0_63, %c0_64] : memref<8x8x36xf32, #tpu.memory_space<vmem>>, vector<8x8x36xf32>
    %37 = vector.shape_cast %36 : vector<8x8x36xf32> to vector<64x36xf32>
    %c0_65 = arith.constant 0 : index
    %c0_66 = arith.constant 0 : index
    %38 = vector.load %arg2[%c0_65, %c0_66] : memref<36x128xf32, #tpu.memory_space<vmem>>, vector<36x128xf32>
    %cst_67 = arith.constant dense<0.000000e+00> : vector<64x128xf32>
    %39 = tpu.matmul %37, %38, %cst_67 {dimension_numbers = #tpu.dot_dimension_numbers<[1], [0], [0], [1], [0, 0, 1, 1], [], []>} : vector<64x36xf32>, vector<36x128xf32>, vector<64x128xf32> -> vector<64x128xf32>
    %40 = vector.extract_strided_slice %39 {offsets = [0, 0], sizes = [64, 8], strides = [1, 1]} : vector<64x128xf32> to vector<64x8xf32>
    %c0_68 = arith.constant 0 : index
    %c0_69 = arith.constant 0 : index
    %c0_70 = arith.constant 0 : index
    %41 = vector.load %arg3[%c0_68, %c0_69, %c0_70] : memref<1x64x8xf32, #tpu.memory_space<vmem>>, vector<1x64x8xf32>
    %42 = vector.shape_cast %41 : vector<1x64x8xf32> to vector<64x8xf32>
    %43 = vector.shape_cast %40 : vector<64x8xf32> to vector<1x64x8xf32>
    tpu.vector_store %arg3[%c0_68, %c0_69, %c0_70], %43 {strides = array<i32>} : memref<1x64x8xf32, #tpu.memory_space<vmem>>, vector<1x64x8xf32>,
    %cst_71 = arith.constant dense<0.000000e+00> : vector<128xf32>
    %44 = vector.multi_reduction <add>, %39, %cst_71 [0] : vector<64x128xf32> to vector<128xf32>
    %45 = vector.shape_cast %44 : vector<128xf32> to vector<1x128xf32>
    %cst_72 = arith.constant 1.562500e-02 : f32
    %46 = vector.broadcast %cst_72 : f32 to vector<1x128xf32>
    %47 = arith.mulf %45, %46 : vector<1x128xf32>
    %48 = vector.broadcast %47 : vector<1x128xf32> to vector<64x128xf32>
    %49 = arith.subf %39, %48 : vector<64x128xf32>
    %c0_73 = arith.constant 0 : index
    %c0_74 = arith.constant 0 : index
    %c0_75 = arith.constant 0 : index
    %50 = vector.load %arg4[%c0_73, %c0_74, %c0_75] : memref<1x2x128xf32, #tpu.memory_space<vmem>>, vector<1x1x128xf32>
    %51 = vector.shape_cast %50 : vector<1x1x128xf32> to vector<1x128xf32>
    %52 = vector.shape_cast %45 : vector<1x128xf32> to vector<1x1x128xf32>
    tpu.vector_store %arg4[%c0_73, %c0_74, %c0_75], %52 {strides = array<i32>} : memref<1x2x128xf32, #tpu.memory_space<vmem>>, vector<1x1x128xf32>,
    %53 = arith.mulf %49, %49 : vector<64x128xf32>
    %cst_76 = arith.constant dense<0.000000e+00> : vector<128xf32>
    %54 = vector.multi_reduction <add>, %53, %cst_76 [0] : vector<64x128xf32> to vector<128xf32>
    %55 = vector.shape_cast %54 : vector<128xf32> to vector<1x128xf32>
    %c0_77 = arith.constant 0 : index
    %c1_78 = arith.constant 1 : index
    %c0_79 = arith.constant 0 : index
    %56 = vector.load %arg4[%c0_77, %c1_78, %c0_79] : memref<1x2x128xf32, #tpu.memory_space<vmem>>, vector<1x1x128xf32>
    %57 = vector.shape_cast %56 : vector<1x1x128xf32> to vector<1x128xf32>
    %58 = vector.shape_cast %55 : vector<1x128xf32> to vector<1x1x128xf32>
    tpu.vector_store %arg4[%c0_77, %c1_78, %c0_79], %58 {strides = array<i32>} : memref<1x2x128xf32, #tpu.memory_space<vmem>>, vector<1x1x128xf32>,
    return
  }
  func.func @transform_0(%arg0: i32) -> (i32, i32, i32, i32) {
    %c0_i32 = arith.constant 0 : i32
    %c0_i32_0 = arith.constant 0 : i32
    %c0_i32_1 = arith.constant 0 : i32
    %c0_i32_2 = arith.constant 0 : i32
    return %arg0, %c0_i32, %c0_i32_0, %c0_i32_1 : i32, i32, i32, i32
  }
  func.func @transform_1(%arg0: i32) -> (i32, i32) {
    %c0_i32 = arith.constant 0 : i32
    %c0_i32_0 = arith.constant 0 : i32
    %c0_i32_1 = arith.constant 0 : i32
    return %c0_i32, %c0_i32_0 : i32, i32
  }
  func.func @transform_2(%arg0: i32) -> (i32, i32, i32) {
    %c0_i32 = arith.constant 0 : i32
    %c0_i32_0 = arith.constant 0 : i32
    %c0_i32_1 = arith.constant 0 : i32
    return %arg0, %c0_i32, %c0_i32_0 : i32, i32, i32
  }
  func.func @transform_3(%arg0: i32) -> (i32, i32, i32) {
    %c0_i32 = arith.constant 0 : i32
    %c0_i32_0 = arith.constant 0 : i32
    %c0_i32_1 = arith.constant 0 : i32
    return %arg0, %c0_i32, %c0_i32_0 : i32, i32, i32
  }
}

module attributes {stable_mosaic.version = 11 : i64} {
  func.func @_bn_relu_kernel(%arg0: i32, %arg1: memref<1x64x8xf32, #tpu.memory_space<vmem>>, %arg2: memref<1x8xf32, #tpu.memory_space<vmem>>, %arg3: memref<1x8xf32, #tpu.memory_space<vmem>>, %arg4: memref<1x64x8xf32, #tpu.memory_space<vmem>>) attributes {dimension_semantics = [#tpu.dimension_semantics<parallel>], iteration_bounds = array<i64: 2>, scalar_prefetch = 0 : i64, scratch_operands = 0 : i64, tpu.core_type = #tpu.core_type<tc>, window_params = [{transform_indices = @transform_0, window_bounds = array<i64: 1, 64, 8>}, {pipeline_mode = #tpu.pipeline_mode<synchronous>, transform_indices = @transform_1, window_bounds = array<i64: 1, 8>}, {pipeline_mode = #tpu.pipeline_mode<synchronous>, transform_indices = @transform_2, window_bounds = array<i64: 1, 8>}, {transform_indices = @transform_3, window_bounds = array<i64: 1, 64, 8>}]} {
    %c0 = arith.constant 0 : index
    %c0_0 = arith.constant 0 : index
    %c0_1 = arith.constant 0 : index
    %0 = vector.load %arg1[%c0, %c0_0, %c0_1] : memref<1x64x8xf32, #tpu.memory_space<vmem>>, vector<1x64x8xf32>
    %1 = vector.shape_cast %0 : vector<1x64x8xf32> to vector<64x8xf32>
    %c0_2 = arith.constant 0 : index
    %c0_3 = arith.constant 0 : index
    %2 = vector.load %arg2[%c0_2, %c0_3] : memref<1x8xf32, #tpu.memory_space<vmem>>, vector<1x8xf32>
    %3 = vector.broadcast %2 : vector<1x8xf32> to vector<64x8xf32>
    %4 = arith.mulf %1, %3 : vector<64x8xf32>
    %c0_4 = arith.constant 0 : index
    %c0_5 = arith.constant 0 : index
    %5 = vector.load %arg3[%c0_4, %c0_5] : memref<1x8xf32, #tpu.memory_space<vmem>>, vector<1x8xf32>
    %6 = vector.broadcast %5 : vector<1x8xf32> to vector<64x8xf32>
    %7 = arith.addf %4, %6 : vector<64x8xf32>
    %cst = arith.constant 0.000000e+00 : f32
    %8 = vector.broadcast %cst : f32 to vector<64x8xf32>
    %9 = arith.maximumf %7, %8 : vector<64x8xf32>
    %c0_6 = arith.constant 0 : index
    %c0_7 = arith.constant 0 : index
    %c0_8 = arith.constant 0 : index
    %10 = vector.load %arg4[%c0_6, %c0_7, %c0_8] : memref<1x64x8xf32, #tpu.memory_space<vmem>>, vector<1x64x8xf32>
    %11 = vector.shape_cast %10 : vector<1x64x8xf32> to vector<64x8xf32>
    %12 = vector.shape_cast %9 : vector<64x8xf32> to vector<1x64x8xf32>
    tpu.vector_store %arg4[%c0_6, %c0_7, %c0_8], %12 {strides = array<i32>} : memref<1x64x8xf32, #tpu.memory_space<vmem>>, vector<1x64x8xf32>,
    return
  }
  func.func @transform_0(%arg0: i32) -> (i32, i32, i32) {
    %c0_i32 = arith.constant 0 : i32
    %c0_i32_0 = arith.constant 0 : i32
    %c0_i32_1 = arith.constant 0 : i32
    return %arg0, %c0_i32, %c0_i32_0 : i32, i32, i32
  }
  func.func @transform_1(%arg0: i32) -> (i32, i32) {
    %c0_i32 = arith.constant 0 : i32
    %c0_i32_0 = arith.constant 0 : i32
    %c0_i32_1 = arith.constant 0 : i32
    return %c0_i32, %c0_i32_0 : i32, i32
  }
  func.func @transform_2(%arg0: i32) -> (i32, i32) {
    %c0_i32 = arith.constant 0 : i32
    %c0_i32_0 = arith.constant 0 : i32
    %c0_i32_1 = arith.constant 0 : i32
    return %c0_i32, %c0_i32_0 : i32, i32
  }
  func.func @transform_3(%arg0: i32) -> (i32, i32, i32) {
    %c0_i32 = arith.constant 0 : i32
    %c0_i32_0 = arith.constant 0 : i32
    %c0_i32_1 = arith.constant 0 : i32
    return %arg0, %c0_i32, %c0_i32_0 : i32, i32, i32
  }
}

</mosaic_0001>

<bundles_post_ra>
// kernel: down_conv_bn_relu.3
= control target key start
LH: loop header
LB: loop body
LE: loop exit
PB: predicated region body
PF: predicated region fallthrough
CT: control target
= control target key end

     0   :  { %s326_s12 = smov 0   ;;  %s357_s0 = inlined_call_operand.vmem [shape: f32[2,64,8], index: 0, kind: input, shape index: {}]   ;;  %s358_s1 = inlined_call_operand.vmem [shape: f32[1,8], index: 1, kind: input, shape index: {}]   ;;  %s359_s2 = inlined_call_operand.vmem [shape: f32[1,8], index: 2, kind: input, shape index: {}]   ;;  %s360_s3 = inlined_call_operand.vmem [shape: f32[2,64,8], index: 3, kind: output, shape index: {}]  }
   0x1 LB: > { %s275_s13 = sadd.s32 4294967295, %s304_s12   ;;  %p279_p0 = scmp.ge.s32.totalorder %s304_s12, 1  ;;  %s304_s12 = sphi %s326_s12, %s13_s12  }
   0x2   : > { %p137_p1 = scmp.lt.s32.totalorder %s304_s12, 3 }
   0x4   : > { %p138_p2 = pnand %p279_p0, %p137_p1 }
   0x5   : > { %p161_p3 = scmp.lt.s32.totalorder (!%p138_p2), %s275_s13, 1 }
   0x6   : > { %141 = sbr.rel (%p138_p2) target bundleno = 29 (0x1d), region = 32 }
   0xb   : > { %s362_s13 = smov (!%p161_p3, %s275_s13), 1  ;;  %v296_v0 = vld [vmem:[%s358_s1] ss:$0 sm:$0xff]  ;;  %vm211_vm0 = vcmask 64512  }
   0xc   : > { %s286_s16 = sshll.u32 %s362_s13, 6  ;;  %v297_v1 = vld [vmem:[%s359_s2] ss:$0 sm:$0xff] }
   0xd   : > { %s165_s19 = scalar_lea.vmem %s357_s0, %s286_s16  ;;  %s170_s24 = scalar_lea.vmem %s360_s3, %s286_s16 }
   0xe   : > { %v171_v2 = vld [vmem:[%s165_s19] sm:$0xff]  ;;  %v172_v3 = vld [vmem:[%s165_s19 + $0x8] sm:$0xff]  ;;  %v173_v4 = vld [vmem:[%s165_s19 + $0x10] sm:$0xff] }
   0xf   : > { %v183_v5 = vmul.f32 %v296_v0, %v171_v2  ;;  %v184_v6 = vmul.f32 %v296_v0, %v172_v3  ;;  %v185_v7 = vmul.f32 %v296_v0, %v173_v4  ;;  %v174_v8 = vld [vmem:[%s165_s19 + $0x18] sm:$0xff]  ;;  %v175_v9 = vld [vmem:[%s165_s19 + $0x20] sm:$0xff]  ;;  %v176_v10 = vld [vmem:[%s165_s19 + $0x28] sm:$0xff] }
  0x10   : > { %v186_v11 = vmul.f32 %v296_v0, %v174_v8  ;;  %v187_v12 = vmul.f32 %v296_v0, %v175_v9  ;;  %v188_v13 = vmul.f32 %v296_v0, %v176_v10  ;;  %v177_v14 = vld [vmem:[%s165_s19 + $0x30] sm:$0xff]  ;;  %v178_v15 = vld [vmem:[%s165_s19 + $0x38] sm:$0xff] }
  0x11   : > { %v195_v16 = vadd.f32 %v297_v1, %v183_v5  ;;  %v196_v17 = vadd.f32 %v297_v1, %v184_v6  ;;  %v197_v18 = vadd.f32 %v297_v1, %v185_v7  ;;  %v189_v19 = vmul.f32 %v296_v0, %v177_v14 }
  0x12   : > { %v198_v20 = vadd.f32 %v297_v1, %v186_v11  ;;  %v199_v21 = vadd.f32 %v297_v1, %v187_v12  ;;  %v200_v22 = vadd.f32 %v297_v1, %v188_v13  ;;  %v190_v23 = vmul.f32 %v296_v0, %v178_v15 }
  0x13   : > { %v203_v24 = vmax.f32 %v195_v16, 0.0  ;;  %v204_v25 = vmax.f32 %v196_v17, 0.0  ;;  %v205_v26 = vmax.f32 %v197_v18, 0.0  ;;  %v201_v27 = vadd.f32 %v297_v1, %v189_v19 }
  0x14   : > { %v206_v28 = vmax.f32 %v198_v20, 0.0  ;;  %v202_v29 = vadd.f32 %v297_v1, %v190_v23  ;;  %v207_v30 = vmax.f32 %v199_v21, 0.0  ;;  %v208_v31 = vmax.f32 %v200_v22, 0.0 }
  0x15   : > { %212 = vst.msk [vmem:[%s170_s24] sm:$0xff] %vm211_vm0, %v203_v24  ;;  %v209_v32 = vmax.f32 %v201_v27, 0.0 }
  0x16   : > { %213 = vst.msk [vmem:[%s170_s24 + $0x8] sm:$0xff] %vm211_vm0, %v204_v25  ;;  %v210_v33 = vmax.f32 %v202_v29, 0.0 }
  0x17   : > { %214 = vst.msk [vmem:[%s170_s24 + $0x10] sm:$0xff] %vm211_vm0, %v205_v26 }
  0x18   : > { %215 = vst.msk [vmem:[%s170_s24 + $0x18] sm:$0xff] %vm211_vm0, %v206_v28 }
  0x19   : > { %216 = vst.msk [vmem:[%s170_s24 + $0x20] sm:$0xff] %vm211_vm0, %v207_v30 }
  0x1a   : > { %217 = vst.msk [vmem:[%s170_s24 + $0x28] sm:$0xff] %vm211_vm0, %v208_v31 }
  0x1b   : > { %218 = vst.msk [vmem:[%s170_s24 + $0x30] sm:$0xff] %vm211_vm0, %v209_v32 }
  0x1c   : > { %219 = vst.msk [vmem:[%s170_s24 + $0x38] sm:$0xff] %vm211_vm0, %v210_v33 }
  0x1d PF: > { %s13_s12 = sadd.s32 1, %s304_s12  }
  0x1e   : > { %p10_p4 = scmp.ge.s32.totalorder %s13_s12, 4  }
  0x20   :  { %12 = sbr.rel (!%p10_p4) target bundleno = 1 (0x1), region = 62 }

// kernel: down_conv_bn_relu.2
= control target key start
LH: loop header
LB: loop body
LE: loop exit
PB: predicated region body
PF: predicated region fallthrough
CT: control target
= control target key end

     0   :  { %s1049_s12 = smov 0   ;;  %s1447_s0 = inlined_call_operand.vmem [shape: f32[2,16,8,8], index: 0, kind: input, shape index: {}]   ;;  %s1448_s1 = inlined_call_operand.vmem [shape: f32[36,128], index: 1, kind: input, shape index: {}]   ;;  %s1449_s2 = inlined_call_operand.vmem [shape: f32[2,64,8], index: 2, kind: output, shape index: {0}]   ;;  %s1450_s3 = inlined_call_operand.vmem [shape: f32[2,2,128], index: 3, kind: output, shape index: {1}]  }
   0x1 LB: > { %s955_s13 = sadd.s32 4294967295, %s1017_s12   ;;  %p959_p0 = scmp.ge.s32.totalorder %s1017_s12, 1  ;;  %s1017_s12 = sphi %s1049_s12, %s14_s12  }
   0x2   : > { %p140_p1 = scmp.lt.s32.totalorder %s1017_s12, 3 }
   0x4   : > { %p141_p2 = pnand %p959_p0, %p140_p1 }
   0x5   : > { %p168_p3 = scmp.lt.s32.totalorder (!%p141_p2), %s955_s13, 1  ;;  %s1019_s18 = smov (!%p141_p2), 124  }
   0x6   : > { %144 = sbr.rel (%p141_p2) target bundleno = 614 (0x266), region = 28  ;;  %s1021_s19 = smov (!%p141_p2), 4  }
   0x7   : > { %s1022_s20 = smov (!%p141_p2), 8   ;;  %s1023_s21 = smov (!%p141_p2), 12  }
   0x8   : > { %s1024_s22 = smov (!%p141_p2), 16   ;;  %s1025_s23 = smov (!%p141_p2), 20  }
   0x9   : > { %s1026_s24 = smov (!%p141_p2), 24   ;;  %s1027_s25 = smov (!%p141_p2), 28  }
   0xa   : > { %s1028_s26 = smov (!%p141_p2), 32  }
   0xb   : > { %s1452_s13 = smov (!%p168_p3, %s955_s13), 1  ;;  %vm286_vm0 = vcmask 31744   ;;  %vm288_vm1 = vcmask 25600   ;;  %v1020_v16 = vmov 0.0   ;;  %vm293_vm2 = vcmask 24576  }
   0xc   : > { %s976_s14 = sshll.u32 %s1452_s13, 7  ;;  %287 = vst.msk [vmem:[#allocation2] sm:$0xff] %vm286_vm0, %v1020_v16  ;;  %vm379_vm3 = vcmask 64544   ;;  %vm428_vm4 = vcmask 97344   ;;  %vm477_vm5 = vcmask 130144   ;;  %vm770_vm6 = vcmask 1043456  }
   0xd   : > { %s1063_s17 = scalar_lea.vmem %s1447_s0, %s976_s14  ;;  %289 = vst.msk [vmem:[#allocation2 + $0x8] sm:$0x3] %vm288_vm1, %v1020_v16  ;;  %vm526_vm7 = vcmask 162944   ;;  %vm575_vm8 = vcmask 195744   ;;  %vm625_vm9 = vcmask 228544   ;;  %vm674_vm10 = vcmask 261344  }
   0xe   : > { %v1066_v0 = vld [vmem:[%s1063_s17 + $0x30] sm:$0xff]  ;;  %v1069_v1 = vld [vmem:[%s1063_s17] sm:$0xff]  ;;  %v1078_v3 = vld [vmem:[%s1063_s17 + $0x38] sm:$0xff]  ;;  %291 = vst.msk [vmem:[#allocation2 + $0x90] sm:$0xff] %vm286_vm0, %v1020_v16  ;;  %vm723_vm11 = vcmask 294144   ;;  %vm745_vm12 = vcmask 293888  }
   0xf   : > { %226 = vrot.lane.b32.xlu1 %v1066_v0, %s1019_s18  ;;  %214 = vrot.lane.b32.xlu0 %v1069_v1, %s1019_s18  ;;  %v184_v2 = vld [vmem:[%s1063_s17 + $0x10] sm:$0xff]  ;;  %v1081_v4 = vld [vmem:[%s1063_s17 + $0x8] sm:$0xff]  ;;  %292 = vst.msk [vmem:[#allocation2 + $0x98] sm:$0x3] %vm288_vm1, %v1020_v16  ;;  %s977_s10 = sshll.u32 %s1452_s13, 6  ;;  %vm815_vm13 = vcmask 64512  }
  0x10   : > { %218 = vrot.lane.b32.xlu2 %v184_v2, %s1019_s18  ;;  %v185_v5 = vld [vmem:[%s1063_s17 + $0x18] sm:$0xff]  ;;  %v1090_v6 = vld [vmem:[%s1063_s17 + $0x48] sm:$0xff]  ;;  %v1093_v7 = vld [vmem:[%s1063_s17 + $0x40] sm:$0xff]  ;;  %304 = vst.msk [vmem:[#allocation2 + $0x9] sm:$0x1] %vm293_vm2, %v1020_v16  ;;  %s177_s15 = scalar_lea.vmem %s1449_s2, %s977_s10  ;;  %s964_s16 = sshll.u32 %s1452_s13, 1 }
  0x11   : > { %v1096_v8 = vld [vmem:[%s1063_s17 + $0x20] sm:$0xff]  ;;  %v1105_v9 = vld [vmem:[%s1063_s17 + $0x28] sm:$0xff]  ;;  %v1108_v10 = vld [vmem:[%s1063_s17 + $0x50] sm:$0xff]  ;;  %294 = vst.msk [vmem:[#allocation2] sm:$0x1] %vm293_vm2, %v1020_v16 }
  0x12   : > { %v1111_v11 = vld [vmem:[%s1063_s17 + $0x58] sm:$0xff]  ;;  %v1120_v12 = vld [vmem:[%s1063_s17 + $0x68] sm:$0xff]  ;;  %v1123_v13 = vld [vmem:[%s1063_s17 + $0x60] sm:$0xff]  ;;  %295 = vst.msk [vmem:[#allocation2 + $0x10] sm:$0x1] %vm293_vm2, %v1020_v16 }
  0x13   : > { %v1126_v14 = vld [vmem:[%s1063_s17 + $0x70] sm:$0xff]  ;;  %v1135_v15 = vld [vmem:[%s1063_s17 + $0x78] sm:$0xff]  ;;  %296 = vst.msk [vmem:[#allocation2 + $0x20] sm:$0x1] %vm293_vm2, %v1020_v16 }
  0x14   : > { %v339_v18 = vld [vmem:[#allocation2 + $0x1] sm:$0xff]  ;;  %297 = vst.msk [vmem:[#allocation2 + $0x30] sm:$0x1] %vm293_vm2, %v1020_v16 }
  0x15   : > { %298 = vst.msk [vmem:[#allocation2 + $0x40] sm:$0x1] %vm293_vm2, %v1020_v16 }
  0x16   : > { %299 = vst.msk [vmem:[#allocation2 + $0x50] sm:$0x1] %vm293_vm2, %v1020_v16 }
  0x17   : > { %228 = vrot.lane.b32.xlu1 %v1078_v3, %s1019_s18  ;;  %216 = vrot.lane.b32.xlu0 %v1081_v4, %s1019_s18  ;;  %v388_v19 = vld [vmem:[#allocation2 + $0x2] sm:$0xff]  ;;  %300 = vst.msk [vmem:[#allocation2 + $0x60] sm:$0x1] %vm293_vm2, %v1020_v16 }
  0x18   : > { %220 = vrot.lane.b32.xlu2 %v185_v5, %s1019_s18  ;;  %301 = vst.msk [vmem:[#allocation2 + $0x70] sm:$0x1] %vm293_vm2, %v1020_v16 }
  0x19   : > { %302 = vst.msk [vmem:[#allocation2 + $0x80] sm:$0x1] %vm293_vm2, %v1020_v16 }
  0x1a   : > { %303 = vst.msk [vmem:[#allocation2 + $0x90] sm:$0x1] %vm293_vm2, %v1020_v16 }
  0x1b   : > { %305 = vst.msk [vmem:[#allocation2 + $0x19] sm:$0x1] %vm293_vm2, %v1020_v16 }
  0x1c   : > { %306 = vst.msk [vmem:[#allocation2 + $0x29] sm:$0x1] %vm293_vm2, %v1020_v16 }
  0x1d   : > { %307 = vst.msk [vmem:[#allocation2 + $0x39] sm:$0x1] %vm293_vm2, %v1020_v16 }
  0x1e   : > { %308 = vst.msk [vmem:[#allocation2 + $0x49] sm:$0x1] %vm293_vm2, %v1020_v16 }
  0x1f   : > { %232 = vrot.lane.b32.xlu1 %v1090_v6, %s1019_s18  ;;  %230 = vrot.lane.b32.xlu0 %v1093_v7, %s1019_s18  ;;  %309 = vst.msk [vmem:[#allocation2 + $0x59] sm:$0x1] %vm293_vm2, %v1020_v16 }
  0x20   : > { %222 = vrot.lane.b32.xlu2 %v1096_v8, %s1019_s18  ;;  %310 = vst.msk [vmem:[#allocation2 + $0x69] sm:$0x1] %vm293_vm2, %v1020_v16 }
  0x21   : > { %311 = vst.msk [vmem:[#allocation2 + $0x79] sm:$0x1] %vm293_vm2, %v1020_v16 }
  0x22   : > { %312 = vst.msk [vmem:[#allocation2 + $0x89] sm:$0x1] %vm293_vm2, %v1020_v16 }
  0x23   : > { %313 = vst.msk [vmem:[#allocation2 + $0x99] sm:$0x1] %vm293_vm2, %v1020_v16  ;;  %v323_v16 = vld [vmem:[#allocation2] sm:$0xff] }
  0x24   : > { %331 = vst.msk [vmem:[#allocation3] sm:$0xff] %vm286_vm0, %v323_v16 }
  0x27   : > { %224 = vrot.lane.b32.xlu0 %v1105_v9, %s1019_s18  ;;  %234 = vrot.lane.b32.xlu1 %v1108_v10, %s1019_s18 }
  0x28   : > { %236 = vrot.lane.b32.xlu2 %v1111_v11, %s1019_s18 }
  0x2f   : > { %240 = vrot.lane.b32.xlu1 %v1120_v12, %s1019_s18  ;;  %238 = vrot.lane.b32.xlu0 %v1123_v13, %s1019_s18 }
  0x30   : > { %242 = vrot.lane.b32.xlu2 %v1126_v14, %s1019_s18 }
  0x37   : > { %244 = vrot.lane.b32.xlu0 %v1135_v15, %s1019_s18  ;;  %355 = vrot.lane.b32.xlu1 %v339_v18, %s1021_s19 }
  0x38   : > { %404 = vrot.lane.b32.xlu2 %v388_v19, %s1022_s20 }
  0x6a   : > { %v219_v17 = vpop.permute.xlu2 %218 }
  0x6b   : > { %v264_v20 = vmax.f32 %v184_v2, %v219_v17 }
  0x72   : > { %v221_v21 = vpop.permute.xlu2 %220 }
  0x73   : > { %v265_v22 = vmax.f32 %v185_v5, %v221_v21 }
  0x75   : > { %v279_v23 = vmax.f32 %v264_v20, %v265_v22 }
  0x77   : > { %316 = vst.msk [vmem:[#allocation2 + $0x21] sm:$0xff] %vm286_vm0, %v279_v23 }
  0x7a   : > { %v223_v33 = vpop.permute.xlu2 %222 }
  0x7b   : > { %v266_v46 = vmax.f32 %v1096_v8, %v223_v33 }
  0x7e   : > { %v1164_v24 = vld [vmem:[#allocation2 + $0x20] sm:$0xff] }
  0x7f   : > { %333 = vst.msk [vmem:[#allocation3 + $0x10] sm:$0xff] %vm286_vm0, %v1164_v24  ;;  %v1199_v56 = vld [vmem:[#allocation2 + $0x21] sm:$0xff] }
  0x81   : > { %v227_v25 = vpop.permute.xlu1 %226  ;;  %v215_v26 = vpop.permute.xlu0 %214 }
  0x82   : > { %v268_v29 = vmax.f32 %v1066_v0, %v227_v25  ;;  %v262_v30 = vmax.f32 %v1069_v1, %v215_v26  ;;  %v237_v43 = vpop.permute.xlu2 %236  ;;  %v390_v1 = vld [vmem:[#allocation2 + $0x22] sm:$0xff] }
  0x83   : > { %v273_v47 = vmax.f32 %v1111_v11, %v237_v43 }
  0x89   : > { %v229_v27 = vpop.permute.xlu1 %228  ;;  %v217_v28 = vpop.permute.xlu0 %216 }
  0x8a   : > { %v269_v31 = vmax.f32 %v1078_v3, %v229_v27  ;;  %v263_v32 = vmax.f32 %v1081_v4, %v217_v28  ;;  %v744_v28 = vld [vmem:[%s1448_s1 + $0x20] sm:$0xf] }
  0x8b   : > { %965 = vmatpush.msk.msra.mxu0 %vm770_vm6, %v744_v28  ;;  %979 = vmatpush.msk.msra.mxu2 %vm770_vm6, %v744_v28 }
  0x8c   : > { %v281_v34 = vmax.f32 %v268_v29, %v269_v31  ;;  %v278_v35 = vmax.f32 %v262_v30, %v263_v32  ;;  %v743_v29 = vld [vmem:[%s1448_s1 + $0x18] sm:$0xff]  ;;  %978 = vmatpush.msk.msra.mxu1 %vm770_vm6, %v744_v28  ;;  %980 = vmatpush.msk.msra.mxu3 %vm770_vm6, %v744_v28  ;;  %v742_v30 = vld [vmem:[%s1448_s1 + $0x10] sm:$0xff]  ;;  %v741_v31 = vld [vmem:[%s1448_s1 + $0x8] sm:$0xff] }
  0x8d   : > { %786 = vmatpush.msra.mxu0 %v743_v29  ;;  %982 = vmatpush.msra.mxu2 %v743_v29 }
  0x8e   : > { %318 = vst.msk [vmem:[#allocation2 + $0x41] sm:$0xff] %vm286_vm0, %v281_v34  ;;  %981 = vmatpush.msra.mxu1 %v743_v29  ;;  %983 = vmatpush.msra.mxu3 %v743_v29 }
  0x8f   : > { %315 = vst.msk [vmem:[#allocation2 + $0x11] sm:$0xff] %vm286_vm0, %v278_v35  ;;  %787 = vmatpush.msra.mxu0 %v742_v30  ;;  %985 = vmatpush.msra.mxu2 %v742_v30  ;;  %v740_v35 = vld [vmem:[%s1448_s1] sm:$0xff] }
  0x90   : > { %984 = vmatpush.msra.mxu1 %v742_v30  ;;  %986 = vmatpush.msra.mxu3 %v742_v30 }
  0x91   : > { %v233_v36 = vpop.permute.xlu1 %232  ;;  %v231_v37 = vpop.permute.xlu0 %230  ;;  %788 = vmatpush.msra.mxu0 %v741_v31  ;;  %988 = vmatpush.msra.mxu2 %v741_v31 }
  0x92   : > { %v271_v38 = vmax.f32 %v1090_v6, %v233_v36  ;;  %v270_v39 = vmax.f32 %v1093_v7, %v231_v37  ;;  %v243_v7 = vpop.permute.xlu2 %242  ;;  %987 = vmatpush.msra.mxu1 %v741_v31  ;;  %989 = vmatpush.msra.mxu3 %v741_v31 }
  0x93   : > { %789 = vmatpush.msra.mxu0 %v740_v35  ;;  %991 = vmatpush.msra.mxu2 %v740_v35 }
  0x94   : > { %v282_v40 = vmax.f32 %v270_v39, %v271_v38  ;;  %990 = vmatpush.msra.mxu1 %v740_v35  ;;  %992 = vmatpush.msra.mxu3 %v740_v35 }
  0x95   : > { %v1176_v41 = vld [vmem:[#allocation2 + $0x42] sm:$0xff] }
  0x96   : > { %v1178_v42 = vld [vmem:[#allocation2 + $0x41] sm:$0xff]  ;;  %319 = vst.msk [vmem:[#allocation2 + $0x51] sm:$0xff] %vm286_vm0, %v282_v40  ;;  %412 = vrot.lane.b32.xlu2 %v1176_v41, %s1022_s20  ;;  %v437_v45 = vld [vmem:[#allocation2 + $0x10] sm:$0xff] }
  0x97   : > { %v1180_v44 = vld [vmem:[#allocation2 + $0x40] sm:$0xff]  ;;  %363 = vrot.lane.b32.xlu0 %v1178_v42, %s1021_s19  ;;  %453 = vrot.lane.b32.xlu1 %v437_v45, %s1023_s21  ;;  %332 = vst.msk [vmem:[#allocation3 + $0x8] sm:$0xff] %vm286_vm0, %v437_v45  ;;  %v486_v54 = vld [vmem:[#allocation2 + $0x11] sm:$0xff] }
  0x98   : > { %335 = vst.msk [vmem:[#allocation3 + $0x20] sm:$0xff] %vm286_vm0, %v1180_v44  ;;  %v535_v63 = vld [vmem:[#allocation2 + $0x12] sm:$0xff] }
  0x99   : > { %v225_v48 = vpop.permute.xlu0 %224  ;;  %v235_v49 = vpop.permute.xlu1 %234  ;;  %v592_v45 = vld [vmem:[#allocation2 + $0x90] sm:$0xff] }
  0x9a   : > { %v267_v50 = vmax.f32 %v1105_v9, %v225_v48  ;;  %v272_v51 = vmax.f32 %v1108_v10, %v235_v49  ;;  %v276_v9 = vmax.f32 %v1126_v14, %v243_v7  ;;  %v405_v19 = vpop.permute.xlu2 %404 }
  0x9c   : > { %v280_v52 = vmax.f32 %v266_v46, %v267_v50  ;;  %v283_v53 = vmax.f32 %v272_v51, %v273_v47  ;;  %v641_v50 = vld [vmem:[#allocation2 + $0x91] sm:$0xff] }
  0x9d   : > { %v1195_v55 = vld [vmem:[#allocation2 + $0x50] sm:$0xff] }
  0x9e   : > { %317 = vst.msk [vmem:[#allocation2 + $0x31] sm:$0xff] %vm286_vm0, %v280_v52  ;;  %461 = vrot.lane.b32.xlu2 %v1195_v55, %s1023_s21  ;;  %v1210_v61 = vld [vmem:[#allocation2 + $0x51] sm:$0xff] }
  0x9f   : > { %502 = vrot.lane.b32.xlu0 %v486_v54, %s1024_s22  ;;  %359 = vrot.lane.b32.xlu1 %v1199_v56, %s1021_s19  ;;  %320 = vst.msk [vmem:[#allocation2 + $0x61] sm:$0xff] %vm286_vm0, %v283_v53  ;;  %v1231_v5 = vld [vmem:[#allocation2 + $0x52] sm:$0xff] }
  0xa0   : > { %336 = vst.msk [vmem:[#allocation3 + $0x28] sm:$0xff] %vm286_vm0, %v1195_v55  ;;  %v690_v51 = vld [vmem:[#allocation2 + $0x92] sm:$0xff] }
  0xa1   : > { %v241_v57 = vpop.permute.xlu1 %240  ;;  %v239_v58 = vpop.permute.xlu0 %238 }
  0xa2   : > { %v275_v59 = vmax.f32 %v1120_v12, %v241_v57  ;;  %v274_v60 = vmax.f32 %v1123_v13, %v239_v58 }
  0xa4   : > { %v284_v62 = vmax.f32 %v274_v60, %v275_v59 }
  0xa5   : > { %v1212_v0 = vld [vmem:[#allocation2 + $0x30] sm:$0xff] }
  0xa6   : > { %510 = vrot.lane.b32.xlu2 %v1210_v61, %s1024_s22  ;;  %321 = vst.msk [vmem:[#allocation2 + $0x71] sm:$0xff] %vm286_vm0, %v284_v62  ;;  %v589_v2 = vld [vmem:[#allocation2 + $0x60] sm:$0xff]  ;;  %v1241_v12 = vld [vmem:[#allocation2 + $0x31] sm:$0xff] }
  0xa7   : > { %551 = vrot.lane.b32.xlu0 %v535_v63, %s1025_s23  ;;  %408 = vrot.lane.b32.xlu1 %v390_v1, %s1022_s20  ;;  %337 = vst.msk [vmem:[#allocation3 + $0x30] sm:$0xff] %vm286_vm0, %v589_v2  ;;  %v345_v3 = vld [vmem:[#allocation2 + $0x61] sm:$0xff]  ;;  %v1247_v13 = vld [vmem:[#allocation2 + $0x32] sm:$0xff] }
  0xa8   : > { %334 = vst.msk [vmem:[#allocation3 + $0x18] sm:$0xff] %vm286_vm0, %v1212_v0  ;;  %v394_v6 = vld [vmem:[#allocation2 + $0x62] sm:$0xff] }
  0xa9   : > { %v245_v8 = vpop.permute.xlu0 %244  ;;  %v356_v17 = vpop.permute.xlu1 %355 }
  0xaa   : > { %v277_v10 = vmax.f32 %v1135_v15, %v245_v8  ;;  %380 = vst.msk [vmem:[#allocation3] sm:$0xff] %vm379_vm3, %v356_v17 }
  0xab   : > { %429 = vst.msk [vmem:[#allocation3] sm:$0xff] %vm428_vm4, %v405_v19 }
  0xac   : > { %v285_v11 = vmax.f32 %v276_v9, %v277_v10 }
  0xad   : > { %v1222_v4 = vld [vmem:[#allocation2 + $0x70] sm:$0xff] }
  0xae   : > { %457 = vrot.lane.b32.xlu2 %v1212_v0, %s1023_s21  ;;  %338 = vst.msk [vmem:[#allocation3 + $0x38] sm:$0xff] %vm286_vm0, %v1222_v4  ;;  %v1254_v14 = vld [vmem:[#allocation2 + $0x71] sm:$0xff] }
  0xaf   : > { %601 = vrot.lane.b32.xlu0 %v1164_v24, %s1026_s24  ;;  %367 = vrot.lane.b32.xlu1 %v345_v3, %s1021_s19  ;;  %322 = vst.msk [vmem:[#allocation2 + $0x81] sm:$0xff] %vm286_vm0, %v285_v11  ;;  %v1269_v15 = vld [vmem:[#allocation2 + $0x72] sm:$0xff] }
  0xb6   : > { %416 = vrot.lane.b32.xlu2 %v394_v6, %s1022_s20  ;;  %v1275_v18 = vld [vmem:[#allocation2 + $0x80] sm:$0xff] }
  0xb7   : > { %559 = vrot.lane.b32.xlu0 %v1231_v5, %s1025_s23  ;;  %650 = vrot.lane.b32.xlu1 %v1199_v56, %s1027_s25  ;;  %v1289_v21 = vld [vmem:[#allocation2 + $0x81] sm:$0xff] }
  0xb8   : > { %v1296_v23 = vld [vmem:[#allocation2 + $0x82] sm:$0xff] }
  0xbe   : > { %699 = vrot.lane.b32.xlu2 %v390_v1, %s1028_s26 }
  0xbf   : > { %506 = vrot.lane.b32.xlu0 %v1241_v12, %s1024_s22  ;;  %609 = vrot.lane.b32.xlu1 %v589_v2, %s1026_s24 }
  0xc6   : > { %555 = vrot.lane.b32.xlu2 %v1247_v13, %s1025_s23 }
  0xc7   : > { %357 = vrot.lane.b32.xlu0 %v486_v54, %s1021_s19  ;;  %465 = vrot.lane.b32.xlu1 %v1222_v4, %s1023_s21 }
  0xce   : > { %514 = vrot.lane.b32.xlu2 %v1254_v14, %s1024_s22 }
  0xcf   : > { %658 = vrot.lane.b32.xlu0 %v345_v3, %s1027_s25  ;;  %406 = vrot.lane.b32.xlu1 %v535_v63, %s1022_s20 }
  0xd6   : > { %365 = vrot.lane.b32.xlu2 %v1210_v61, %s1021_s19 }
  0xd7   : > { %605 = vrot.lane.b32.xlu0 %v1180_v44, %s1026_s24  ;;  %707 = vrot.lane.b32.xlu1 %v394_v6, %s1028_s26 }
  0xde   : > { %654 = vrot.lane.b32.xlu2 %v1178_v42, %s1027_s25 }
  0xdf   : > { %455 = vrot.lane.b32.xlu0 %v1164_v24, %s1023_s21  ;;  %563 = vrot.lane.b32.xlu1 %v1269_v15, %s1025_s23 }
  0xe6   : > { %613 = vrot.lane.b32.xlu2 %v1275_v18, %s1026_s24 }
  0xe7   : > { %414 = vrot.lane.b32.xlu0 %v1231_v5, %s1022_s20  ;;  %504 = vrot.lane.b32.xlu1 %v1199_v56, %s1024_s22 }
  0xee   : > { %463 = vrot.lane.b32.xlu2 %v589_v2, %s1023_s21 }
  0xef   : > { %703 = vrot.lane.b32.xlu0 %v1176_v41, %s1028_s26  ;;  %361 = vrot.lane.b32.xlu1 %v1241_v12, %s1021_s19 }
  0xf0   : > { %v413_v20 = vpop.permute.xlu2 %412 }
  0xf6   : > { %410 = vrot.lane.b32.xlu2 %v1247_v13, %s1022_s20 }
  0xf7   : > { %553 = vrot.lane.b32.xlu0 %v390_v1, %s1025_s23  ;;  %662 = vrot.lane.b32.xlu1 %v1289_v21, %s1027_s25 }
  0xf8   : > { %v462_v22 = vpop.permute.xlu2 %461 }
  0xfe   : > { %711 = vrot.lane.b32.xlu2 %v1296_v23, %s1028_s26 }
  0xff   : > { %512 = vrot.lane.b32.xlu0 %v345_v3, %s1024_s22  ;;  %603 = vrot.lane.b32.xlu1 %v1212_v0, %s1026_s24 }
 0x100   : > { %v511_v24 = vpop.permute.xlu2 %510 }
 0x106   : > { %561 = vrot.lane.b32.xlu2 %v394_v6, %s1025_s23 }
 0x107   : > { %369 = vrot.lane.b32.xlu0 %v1254_v14, %s1021_s19  ;;  %459 = vrot.lane.b32.xlu1 %v1180_v44, %s1023_s21  ;;  %s1440_s19 = scalar_lea.vmem %s1450_s3, %s964_s16 }
 0x108   : > { %v458_v25 = vpop.permute.xlu2 %457 }
 0x109   : > { %v364_v26 = vpop.permute.xlu0 %363  ;;  %v454_v27 = vpop.permute.xlu1 %453 }
 0x10a   : > { %384 = vst.msk [vmem:[#allocation3 + $0x20] sm:$0xff] %vm379_vm3, %v364_v26 }
 0x10b   : > { %478 = vst.msk [vmem:[#allocation3] sm:$0xff] %vm477_vm5, %v454_v27 }
 0x10c   : > { %433 = vst.msk [vmem:[#allocation3 + $0x20] sm:$0xff] %vm428_vm4, %v413_v20 }
 0x10d   : > { %482 = vst.msk [vmem:[#allocation3 + $0x20] sm:$0xff] %vm477_vm5, %v462_v22 }
 0x10e   : > { %531 = vst.msk [vmem:[#allocation3 + $0x20] sm:$0xff] %vm526_vm7, %v511_v24  ;;  %508 = vrot.lane.b32.xlu2 %v1178_v42, %s1024_s22 }
 0x10f   : > { %652 = vrot.lane.b32.xlu0 %v1241_v12, %s1027_s25  ;;  %418 = vrot.lane.b32.xlu1 %v1269_v15, %s1022_s20 }
 0x110   : > { %v417_v32 = vpop.permute.xlu2 %416 }
 0x111   : > { %v503_v33 = vpop.permute.xlu0 %502  ;;  %v360_v34 = vpop.permute.xlu1 %359 }
 0x112   : > { %527 = vst.msk [vmem:[#allocation3] sm:$0xff] %vm526_vm7, %v503_v33 }
 0x113   : > { %382 = vst.msk [vmem:[#allocation3 + $0x10] sm:$0xff] %vm379_vm3, %v360_v34 }
 0x116   : > { %467 = vrot.lane.b32.xlu2 %v1275_v18, %s1023_s21 }
 0x117   : > { %611 = vrot.lane.b32.xlu0 %v1222_v4, %s1026_s24  ;;  %701 = vrot.lane.b32.xlu1 %v1247_v13, %s1028_s26 }
 0x118   : > { %v700_v36 = vpop.permute.xlu2 %699 }
 0x119   : > { %v552_v37 = vpop.permute.xlu0 %551  ;;  %v409_v38 = vpop.permute.xlu1 %408 }
 0x11a   : > { %576 = vst.msk [vmem:[#allocation3] sm:$0xff] %vm575_vm8, %v552_v37 }
 0x11b   : > { %431 = vst.msk [vmem:[#allocation3 + $0x10] sm:$0xff] %vm428_vm4, %v409_v38 }
 0x11c   : > { %480 = vst.msk [vmem:[#allocation3 + $0x10] sm:$0xff] %vm477_vm5, %v458_v25 }
 0x11e   : > { %516 = vrot.lane.b32.xlu2 %v1289_v21, %s1024_s22 }
 0x11f   : > { %557 = vrot.lane.b32.xlu0 %v1176_v41, %s1025_s23  ;;  %660 = vrot.lane.b32.xlu1 %v1254_v14, %s1027_s25 }
 0x120   : > { %v556_v39 = vpop.permute.xlu2 %555 }
 0x121   : > { %v602_v40 = vpop.permute.xlu0 %601  ;;  %v368_v42 = vpop.permute.xlu1 %367 }
 0x122   : > { %626 = vst.msk [vmem:[#allocation3] sm:$0xff] %vm625_vm9, %v602_v40 }
 0x123   : > { %386 = vst.msk [vmem:[#allocation3 + $0x30] sm:$0xff] %vm379_vm3, %v368_v42 }
 0x124   : > { %435 = vst.msk [vmem:[#allocation3 + $0x30] sm:$0xff] %vm428_vm4, %v417_v32 }
 0x126   : > { %565 = vrot.lane.b32.xlu2 %v1296_v23, %s1025_s23 }
 0x127   : > { %607 = vrot.lane.b32.xlu0 %v1195_v55, %s1026_s24  ;;  %709 = vrot.lane.b32.xlu1 %v1269_v15, %s1028_s26 }
 0x128   : > { %v515_v41 = vpop.permute.xlu2 %514 }
 0x129   : > { %v560_v43 = vpop.permute.xlu0 %559  ;;  %v651_v44 = vpop.permute.xlu1 %650 }
 0x12a   : > { %580 = vst.msk [vmem:[#allocation3 + $0x20] sm:$0xff] %vm575_vm8, %v560_v43 }
 0x12b   : > { %675 = vst.msk [vmem:[#allocation3] sm:$0xff] %vm674_vm10, %v651_v44 }
 0x12c   : > { %724 = vst.msk [vmem:[#allocation3] sm:$0xff] %vm723_vm11, %v700_v36 }
 0x12e   : > { %705 = vrot.lane.b32.xlu2 %v1231_v5, %s1028_s26 }
 0x12f   : > { %656 = vrot.lane.b32.xlu0 %v1210_v61, %s1027_s25  ;;  %615 = vrot.lane.b32.xlu1 %v592_v45, %s1026_s24 }
 0x130   : > { %v366_v46 = vpop.permute.xlu2 %365 }
 0x131   : > { %v507_v47 = vpop.permute.xlu0 %506  ;;  %v610_v48 = vpop.permute.xlu1 %609  ;;  %385 = vst.msk [vmem:[#allocation3 + $0x28] sm:$0xff] %vm379_vm3, %v366_v46 }
 0x132   : > { %630 = vst.msk [vmem:[#allocation3 + $0x20] sm:$0xff] %vm625_vm9, %v610_v48 }
 0x133   : > { %v732_v49 = vld [vmem:[#allocation3] sm:$0xff]  ;;  %529 = vst.msk [vmem:[#allocation3 + $0x10] sm:$0xff] %vm526_vm7, %v507_v47 }
 0x134   : > { %966 = vmatmul.msk.f32.vlgmr.msra.gmra.mxu0 %vm745_vm12, %v732_v49  ;;  %578 = vst.msk [vmem:[#allocation3 + $0x10] sm:$0xff] %vm575_vm8, %v556_v39 }
 0x137   : > { %664 = vrot.lane.b32.xlu0 %v641_v50, %s1027_s25  ;;  %713 = vrot.lane.b32.xlu1 %v690_v51, %s1028_s26 }
 0x138   : > { %v655_v52 = vpop.permute.xlu2 %654 }
 0x139   : > { %v358_v53 = vpop.permute.xlu0 %357  ;;  %v466_v54 = vpop.permute.xlu1 %465 }
 0x13a   : > { %381 = vst.msk [vmem:[#allocation3 + $0x8] sm:$0xff] %vm379_vm3, %v358_v53 }
 0x13b   : > { %484 = vst.msk [vmem:[#allocation3 + $0x30] sm:$0xff] %vm477_vm5, %v466_v54 }
 0x13c   : > { %533 = vst.msk [vmem:[#allocation3 + $0x30] sm:$0xff] %vm526_vm7, %v515_v41 }
 0x140   : > { %v614_v55 = vpop.permute.xlu2 %613 }
 0x141   : > { %v659_v56 = vpop.permute.xlu0 %658  ;;  %v407_v57 = vpop.permute.xlu1 %406 }
 0x142   : > { %679 = vst.msk [vmem:[#allocation3 + $0x20] sm:$0xff] %vm674_vm10, %v659_v56 }
 0x143   : > { %430 = vst.msk [vmem:[#allocation3 + $0x8] sm:$0xff] %vm428_vm4, %v407_v57 }
 0x148   : > { %v464_v58 = vpop.permute.xlu2 %463 }
 0x149   : > { %v606_v59 = vpop.permute.xlu0 %605  ;;  %v708_v60 = vpop.permute.xlu1 %707 }
 0x14a   : > { %628 = vst.msk [vmem:[#allocation3 + $0x10] sm:$0xff] %vm625_vm9, %v606_v59 }
 0x14b   : > { %728 = vst.msk [vmem:[#allocation3 + $0x20] sm:$0xff] %vm723_vm11, %v708_v60 }
 0x14c   : > { %677 = vst.msk [vmem:[#allocation3 + $0x10] sm:$0xff] %vm674_vm10, %v655_v52 }
 0x150   : > { %v411_v61 = vpop.permute.xlu2 %410 }
 0x151   : > { %v456_v62 = vpop.permute.xlu0 %455  ;;  %v564_v63 = vpop.permute.xlu1 %563 }
 0x152   : > { %479 = vst.msk [vmem:[#allocation3 + $0x8] sm:$0xff] %vm477_vm5, %v456_v62  ;;  %v736_v0 = vld [vmem:[#allocation3 + $0x20] sm:$0xff] }
 0x153   : > { %582 = vst.msk [vmem:[#allocation3 + $0x30] sm:$0xff] %vm575_vm8, %v564_v63  ;;  %970 = vmatmul.msk.f32.vlgmr.msra.gmra.mxu2 %vm745_vm12, %v736_v0 }
 0x154   : > { %632 = vst.msk [vmem:[#allocation3 + $0x30] sm:$0xff] %vm625_vm9, %v614_v55 }
 0x158   : > { %v712_v1 = vpop.permute.xlu2 %711 }
 0x159   : > { %v415_v2 = vpop.permute.xlu0 %414  ;;  %v505_v3 = vpop.permute.xlu1 %504 }
 0x15a   : > { %434 = vst.msk [vmem:[#allocation3 + $0x28] sm:$0xff] %vm428_vm4, %v415_v2 }
 0x15b   : > { %528 = vst.msk [vmem:[#allocation3 + $0x8] sm:$0xff] %vm526_vm7, %v505_v3 }
 0x15c   : > { %483 = vst.msk [vmem:[#allocation3 + $0x28] sm:$0xff] %vm477_vm5, %v464_v58 }
 0x160   : > { %v562_v4 = vpop.permute.xlu2 %561 }
 0x161   : > { %v704_v5 = vpop.permute.xlu0 %703  ;;  %v362_v6 = vpop.permute.xlu1 %361 }
 0x162   : > { %726 = vst.msk [vmem:[#allocation3 + $0x10] sm:$0xff] %vm723_vm11, %v704_v5 }
 0x163   : > { %383 = vst.msk [vmem:[#allocation3 + $0x18] sm:$0xff] %vm379_vm3, %v362_v6 }
 0x164   : > { %432 = vst.msk [vmem:[#allocation3 + $0x18] sm:$0xff] %vm428_vm4, %v411_v61 }
 0x168   : > { %v509_v7 = vpop.permute.xlu2 %508 }
 0x169   : > { %v554_v8 = vpop.permute.xlu0 %553  ;;  %v734_v9 = vld [vmem:[#allocation3 + $0x10] sm:$0xff]  ;;  %v663_v10 = vpop.permute.xlu1 %662 }
 0x16a   : > { %577 = vst.msk [vmem:[#allocation3 + $0x8] sm:$0xff] %vm575_vm8, %v554_v8  ;;  %968 = vmatmul.msk.f32.vlgmr.msra.gmra.mxu1 %vm745_vm12, %v734_v9 }
 0x16b   : > { %681 = vst.msk [vmem:[#allocation3 + $0x30] sm:$0xff] %vm674_vm10, %v663_v10 }
 0x16c   : > { %730 = vst.msk [vmem:[#allocation3 + $0x30] sm:$0xff] %vm723_vm11, %v712_v1 }
 0x170   : > { %v468_v11 = vpop.permute.xlu2 %467 }
 0x171   : > { %v513_v12 = vpop.permute.xlu0 %512  ;;  %v604_v13 = vpop.permute.xlu1 %603 }
 0x172   : > { %532 = vst.msk [vmem:[#allocation3 + $0x28] sm:$0xff] %vm526_vm7, %v513_v12 }
 0x173   : > { %627 = vst.msk [vmem:[#allocation3 + $0x8] sm:$0xff] %vm625_vm9, %v604_v13  ;;  %v738_v14 = vld [vmem:[#allocation3 + $0x30] sm:$0xff] }
 0x174   : > { %581 = vst.msk [vmem:[#allocation3 + $0x28] sm:$0xff] %vm575_vm8, %v562_v4  ;;  %972 = vmatmul.msk.f32.vlgmr.msra.gmra.mxu3 %vm745_vm12, %v738_v14 }
 0x178   : > { %v517_v17 = vpop.permute.xlu2 %516 }
 0x179   : > { %v370_v15 = vpop.permute.xlu0 %369  ;;  %v460_v16 = vpop.permute.xlu1 %459 }
 0x17a   : > { %387 = vst.msk [vmem:[#allocation3 + $0x38] sm:$0xff] %vm379_vm3, %v370_v15 }
 0x17b   : > { %481 = vst.msk [vmem:[#allocation3 + $0x18] sm:$0xff] %vm477_vm5, %v460_v16 }
 0x17c   : > { %530 = vst.msk [vmem:[#allocation3 + $0x18] sm:$0xff] %vm526_vm7, %v509_v7 }
 0x180   : > { %v566_v20 = vpop.permute.xlu2 %565 }
 0x181   : > { %v653_v18 = vpop.permute.xlu0 %652  ;;  %v419_v19 = vpop.permute.xlu1 %418 }
 0x182   : > { %676 = vst.msk [vmem:[#allocation3 + $0x8] sm:$0xff] %vm674_vm10, %v653_v18 }
 0x183   : > { %436 = vst.msk [vmem:[#allocation3 + $0x38] sm:$0xff] %vm428_vm4, %v419_v19 }
 0x184   : > { %485 = vst.msk [vmem:[#allocation3 + $0x38] sm:$0xff] %vm477_vm5, %v468_v11 }
 0x185   : > { %534 = vst.msk [vmem:[#allocation3 + $0x38] sm:$0xff] %vm526_vm7, %v517_v17 }
 0x186   : > { %583 = vst.msk [vmem:[#allocation3 + $0x38] sm:$0xff] %vm575_vm8, %v566_v20 }
 0x188   : > { %v706_v29 = vpop.permute.xlu2 %705 }
 0x189   : > { %v612_v21 = vpop.permute.xlu0 %611  ;;  %v702_v22 = vpop.permute.xlu1 %701 }
 0x18a   : > { %631 = vst.msk [vmem:[#allocation3 + $0x28] sm:$0xff] %vm625_vm9, %v612_v21 }
 0x18b   : > { %725 = vst.msk [vmem:[#allocation3 + $0x8] sm:$0xff] %vm723_vm11, %v702_v22 }
 0x191   : > { %v558_v23 = vpop.permute.xlu0 %557  ;;  %v661_v24 = vpop.permute.xlu1 %660 }
 0x192   : > { %579 = vst.msk [vmem:[#allocation3 + $0x18] sm:$0xff] %vm575_vm8, %v558_v23  ;;  %v733_v25 = vld [vmem:[#allocation3 + $0x8] sm:$0xff] }
 0x193   : > { %680 = vst.msk [vmem:[#allocation3 + $0x28] sm:$0xff] %vm674_vm10, %v661_v24  ;;  %967 = vmatmul.msk.f32.gmra.mxu0 %vm745_vm12, %v733_v25 }
 0x199   : > { %v608_v26 = vpop.permute.xlu0 %607  ;;  %v710_v27 = vpop.permute.xlu1 %709 }
 0x19a   : > { %629 = vst.msk [vmem:[#allocation3 + $0x18] sm:$0xff] %vm625_vm9, %v608_v26 }
 0x19b   : > { %729 = vst.msk [vmem:[#allocation3 + $0x28] sm:$0xff] %vm723_vm11, %v710_v27 }
 0x1a1   : > { %v657_v28 = vpop.permute.xlu0 %656  ;;  %v616_v30 = vpop.permute.xlu1 %615 }
 0x1a2   : > { %678 = vst.msk [vmem:[#allocation3 + $0x18] sm:$0xff] %vm674_vm10, %v657_v28  ;;  %v737_v31 = vld [vmem:[#allocation3 + $0x28] sm:$0xff] }
 0x1a3   : > { %727 = vst.msk [vmem:[#allocation3 + $0x18] sm:$0xff] %vm723_vm11, %v706_v29  ;;  %971 = vmatmul.msk.f32.gmra.mxu2 %vm745_vm12, %v737_v31 }
 0x1a4   : > { %633 = vst.msk [vmem:[#allocation3 + $0x38] sm:$0xff] %vm625_vm9, %v616_v30 }
 0x1a9   : > { %v665_v32 = vpop.permute.xlu0 %664  ;;  %v714_v33 = vpop.permute.xlu1 %713 }
 0x1aa   : > { %682 = vst.msk [vmem:[#allocation3 + $0x38] sm:$0xff] %vm674_vm10, %v665_v32  ;;  %v735_v34 = vld [vmem:[#allocation3 + $0x18] sm:$0xff] }
 0x1ab   : > { %731 = vst.msk [vmem:[#allocation3 + $0x38] sm:$0xff] %vm723_vm11, %v714_v33  ;;  %969 = vmatmul.msk.f32.gmra.mxu1 %vm745_vm12, %v735_v34 }
 0x1b1   : > { %v791_v35 = vpop.f32.mrf.mxu0 }
 0x1b2   : > { %816 = vst.msk [vmem:[%s177_s15] sm:$0xff] %vm815_vm13, %v791_v35  ;;  %v739_v36 = vld [vmem:[#allocation3 + $0x38] sm:$0xff] }
 0x1b3   : > { %973 = vmatmul.msk.f32.gmra.mxu3 %vm745_vm12, %v739_v36 }
 0x1d6   : > { %v803_v37 = vpop.f32.mrf.mxu2 }
 0x1d7   : > { %820 = vst.msk [vmem:[%s177_s15 + $0x20] sm:$0xff] %vm815_vm13, %v803_v37 }
 0x1e7   : > { %v797_v38 = vpop.f32.mrf.mxu1 }
 0x1e8   : > { %818 = vst.msk [vmem:[%s177_s15 + $0x10] sm:$0xff] %vm815_vm13, %v797_v38 }
 0x1f7   : > { %v809_v39 = vpop.f32.mrf.mxu3 }
 0x1f8   : > { %822 = vst.msk [vmem:[%s177_s15 + $0x30] sm:$0xff] %vm815_vm13, %v809_v39 }
 0x210   : > { %v794_v40 = vpop.f32.mrf.mxu0 }
 0x211   : > { %817 = vst.msk [vmem:[%s177_s15 + $0x8] sm:$0xff] %vm815_vm13, %v794_v40  ;;  %v824_v42 = vadd.f32 %v794_v40, %v791_v35 }
 0x213   : > { %v825_v43 = vadd.f32 %v824_v42, %v797_v38 }
 0x226   : > { %v806_v41 = vpop.f32.mrf.mxu2 }
 0x227   : > { %821 = vst.msk [vmem:[%s177_s15 + $0x28] sm:$0xff] %vm815_vm13, %v806_v41 }
 0x228   : > { %v800_v44 = vpop.f32.mrf.mxu1 }
 0x229   : > { %819 = vst.msk [vmem:[%s177_s15 + $0x18] sm:$0xff] %vm815_vm13, %v800_v44  ;;  %v826_v45 = vadd.f32 %v825_v43, %v800_v44 }
 0x22b   : > { %v827_v46 = vadd.f32 %v826_v45, %v803_v37 }
 0x22d   : > { %v828_v47 = vadd.f32 %v827_v46, %v806_v41 }
 0x22f   : > { %v829_v48 = vadd.f32 %v828_v47, %v809_v39 }
 0x236   : > { %v812_v49 = vpop.f32.mrf.mxu3 }
 0x237   : > { %823 = vst.msk [vmem:[%s177_s15 + $0x38] sm:$0xff] %vm815_vm13, %v812_v49  ;;  %v830_v50 = vadd.f32 %v829_v48, %v812_v49 }
 0x239   : > { %v831_v51 = vrot.slane %v830_v50, 4 }
 0x23b   : > { %v832_v52 = vadd.f32 %v831_v51, %v830_v50 }
 0x23d   : > { %v833_v53 = vrot.slane %v832_v52, 2 }
 0x23f   : > { %v834_v54 = vadd.f32 %v833_v53, %v832_v52 }
 0x241   : > { %v835_v55 = vrot.slane %v834_v54, 1 }
 0x243   : > { %v836_v56 = vadd.f32 %v835_v55, %v834_v54 }
 0x245   : > { %v837_v57 = vmul.f32 0.015625, %v836_v56  ;;  %846 = vst [vmem:[%s1440_s19] sm:$0x1] %v836_v56 }
 0x247   : > { %v838_v58 = vsub.f32 %v791_v35, %v837_v57  ;;  %v839_v59 = vsub.f32 %v794_v40, %v837_v57  ;;  %v840_v60 = vsub.f32 %v797_v38, %v837_v57  ;;  %v841_v61 = vsub.f32 %v800_v44, %v837_v57 }
 0x248   : > { %v842_v0 = vsub.f32 %v803_v37, %v837_v57  ;;  %v843_v3 = vsub.f32 %v806_v41, %v837_v57  ;;  %v844_v6 = vsub.f32 %v809_v39, %v837_v57  ;;  %v845_v9 = vsub.f32 %v812_v49, %v837_v57 }
 0x249   : > { %v847_v62 = vmul.f32 %v838_v58, %v838_v58  ;;  %v848_v63 = vmul.f32 %v839_v59, %v839_v59  ;;  %v849_v1 = vmul.f32 %v840_v60, %v840_v60  ;;  %v850_v4 = vmul.f32 %v841_v61, %v841_v61 }
 0x24a   : > { %v851_v7 = vmul.f32 %v842_v0, %v842_v0  ;;  %v852_v10 = vmul.f32 %v843_v3, %v843_v3  ;;  %v853_v12 = vmul.f32 %v844_v6, %v844_v6  ;;  %v854_v14 = vmul.f32 %v845_v9, %v845_v9 }
 0x24b   : > { %v855_v2 = vadd.f32 %v848_v63, %v847_v62 }
 0x24d   : > { %v856_v5 = vadd.f32 %v855_v2, %v849_v1 }
 0x24f   : > { %v857_v8 = vadd.f32 %v856_v5, %v850_v4 }
 0x251   : > { %v858_v11 = vadd.f32 %v857_v8, %v851_v7 }
 0x253   : > { %v859_v13 = vadd.f32 %v858_v11, %v852_v10 }
 0x255   : > { %v860_v15 = vadd.f32 %v859_v13, %v853_v12 }
 0x257   : > { %v861_v16 = vadd.f32 %v860_v15, %v854_v14 }
 0x259   : > { %v862_v17 = vrot.slane %v861_v16, 4 }
 0x25b   : > { %v863_v18 = vadd.f32 %v862_v17, %v861_v16 }
 0x25d   : > { %v864_v19 = vrot.slane %v863_v18, 2 }
 0x25f   : > { %v865_v20 = vadd.f32 %v864_v19, %v863_v18 }
 0x261   : > { %v866_v21 = vrot.slane %v865_v20, 1 }
 0x263   : > { %v867_v22 = vadd.f32 %v866_v21, %v865_v20 }
 0x265   : > { %868 = vst [vmem:[%s1440_s19 + $0x1] sm:$0x1] %v867_v22 }
 0x266 PF: > { %s14_s12 = sadd.s32 1, %s1017_s12  }
 0x267   : > { %p11_p4 = scmp.ge.s32.totalorder %s14_s12, 4  }
 0x269   :  { %13 = sbr.rel (!%p11_p4) target bundleno = 1 (0x1), region = 73 }

</bundles_post_ra>
